<compile_context>
chip_gen: v6e
topology: v6e:2x2x1
jax: 0.10.0
libtpu: 0.0.40
codegen_flags: <defaults>
</compile_context>

<pallas_src>
import functools

import jax
import jax.numpy as jnp
from jax import lax
from jax.experimental import pallas as pl
from jax.experimental.pallas import tpu as pltpu


def _round_up(x, m):
    return (x + m - 1) // m * m


def _adacos_margin_kernel(params_ref, labels_ref, feat_ref, wt_ref,      # inputs
                          loss_ref, s_ref,                               # outputs
                          cos_cache, t_acc, b_acc, m_acc, l_acc, s_scr,  # scratch
                          *, bs, nc, nc_tile):
    phase = pl.program_id(0)          # 0: cosine + AdaCos batch stats, 1: cross entropy
    j = pl.program_id(1)              # class-tile index
    n_tiles = pl.num_programs(1)

    margin = params_ref[0]
    prev_s = params_ref[1]

    # class-column index / masks used by both phases (cheap iota + compares)
    col = j * nc_tile + lax.broadcasted_iota(jnp.int32, (bs, nc_tile), 1)
    col_valid = col < nc                                # mask padded classes
    tgt_mask = labels_ref[...] == col                   # (bs, nc_tile) target mask

    # ---------------- accumulator init ----------------
    @pl.when(jnp.logical_and(phase == 0, j == 0))
    def _init_stats():
        t_acc[...] = jnp.zeros_like(t_acc)
        b_acc[...] = jnp.zeros_like(b_acc)

    @pl.when(jnp.logical_and(phase == 1, j == 0))
    def _init_lse():
        m_acc[...] = jnp.full_like(m_acc, -jnp.inf)
        l_acc[...] = jnp.zeros_like(l_acc)

    # ---------------- phase 0: single pass over the weight ----------------
    @pl.when(phase == 0)
    def _phase0():
        wt = wt_ref[...]                                # (e_pad, nc_tile) matmul dtype
        # column-wise inverse norm; scale the matmul OUTPUT, not the weight tile
        inv_norm = lax.rsqrt(
            jnp.sum(jnp.square(wt.astype(jnp.float32)), axis=0, keepdims=True) + 1e-24)
        cosine = lax.dot_general(feat_ref[...], wt, (((1,), (0,)), ((), ())),
                                 preferred_element_type=jnp.float32)     # (bs, nc_tile)
        cosine = cosine * inv_norm                      # (1, nc_tile) column scale
        cos_cache[j] = cosine.astype(cos_cache.dtype)   # cache for phase 1

        # B sums only the *negative* entries (exclude target column).
        neg_mask = jnp.logical_and(col_valid, jnp.logical_not(tgt_mask))
        b_acc[...] += jnp.sum(jnp.where(neg_mask, jnp.exp(prev_s * cosine), 0.0),
                              axis=-1, keepdims=True)
        t_acc[...] += jnp.sum(jnp.where(tgt_mask, cosine, 0.0),
                              axis=-1, keepdims=True)

    @pl.when(jnp.logical_and(phase == 0, j == n_tiles - 1))
    def _finalize_stats():
        t = t_acc[...]                                   # (bs, 1) target cosine per row
        b_batch = jnp.sum(b_acc[...]) / bs
        b_batch = jnp.maximum(b_batch, 1e-30)            # guard log(0); ref would give -inf

        # torch.median == sorted[(bs-1)//2]; rank-count median, NC independent.
        # (bs, bs) diag-mask trick -- fine for moderate bs, see TODO at top.
        eye = (lax.broadcasted_iota(jnp.int32, (bs, bs), 0)
               == lax.broadcasted_iota(jnp.int32, (bs, bs), 1))
        t_row = jnp.sum(jnp.where(eye, t, 0.0), axis=0, keepdims=True)   # (1, bs)
        k = (bs - 1) // 2
        cnt_less = jnp.sum((t_row < t).astype(jnp.float32), axis=1, keepdims=True)
        cnt_le = jnp.sum((t_row <= t).astype(jnp.float32), axis=1, keepdims=True)
        is_med = jnp.logical_and(cnt_less <= k, cnt_le > k)
        median = jnp.max(jnp.where(is_med, t, -jnp.inf))

        theta = jnp.maximum(median, margin + 0.3)                        # clamp_min
        s_new = jnp.minimum(jnp.log(b_batch) / (theta - margin), 25.0)   # clamp_max
        s_scr[0] = s_new                                 # carry to phase 1

    # ------- phase 1: cross entropy via online logsumexp (reads the cache) -------
    @pl.when(phase == 1)
    def _ce():
        s = s_scr[0]
        cosine = cos_cache[j].astype(jnp.float32)        # no weight DMA / matmul here
        logits = (cosine + margin * tgt_mask.astype(jnp.float32)) * s
        logits = jnp.where(col_valid, logits, -jnp.inf)
        m_prev = m_acc[...]
        m_new = jnp.maximum(m_prev, jnp.max(logits, axis=-1, keepdims=True))
        alpha = jnp.exp(m_prev - m_new)
        l_acc[...] = l_acc[...] * alpha + jnp.sum(jnp.exp(logits - m_new),
                                                  axis=-1, keepdims=True)
        m_acc[...] = m_new

    @pl.when(jnp.logical_and(phase == 1, j == n_tiles - 1))
    def _finalize_loss():
        s = s_scr[0]
        lse = m_acc[...] + jnp.log(l_acc[...])           # (bs, 1)
        tgt_logit = (t_acc[...] + margin) * s            # target logit per row
        loss_ref[0, 0] = jnp.sum(lse - tgt_logit) / bs   # mean CE
        s_ref[0, 0] = s


@functools.partial(jax.jit, static_argnames=("nc_tile", "matmul_dtype", "cache_dtype"))
def _adacos_margin_impl(features, weight, labels, margin, prev_s, *,
                        nc_tile, matmul_dtype, cache_dtype):
    bs, e = features.shape
    nc, e_w = weight.shape
    assert e == e_w and labels.shape == (bs,)
    assert bs % 8 == 0, "batch must be a multiple of 8 (sublane width)"
    # (bf16 path prefers bs % 16 for full sublane packing; not required.)
    # TODO(synk): general batch sizes need padded-row masking of B / median / loss.

    mm_isz = jnp.dtype(matmul_dtype).itemsize
    c_isz = jnp.dtype(cache_dtype).itemsize

    e_pad = _round_up(e, 128)
    if nc_tile is None:
        # target ~2 MiB of streamed weight per grid step
        nc_tile = (2 * 1024 * 1024) // (e_pad * mm_isz)
        nc_tile = max(128, min(4096, nc_tile))
    nc_tile = _round_up(min(nc_tile, _round_up(nc, 128)), 128)
    nc_pad = _round_up(nc, nc_tile)
    n_tiles = nc_pad // nc_tile

    # preprocessing fused by jit: cast + transpose + pad in one pass over weight.
    # (In production keep the parameter stored as (e, nc) to avoid this entirely.)
    f = features.astype(matmul_dtype)
    w_t = weight.astype(matmul_dtype).T                       # (e, nc)
    if e_pad != e:
        f = jnp.pad(f, ((0, 0), (0, e_pad - e)))
    w_t = jnp.pad(w_t, ((0, e_pad - e), (0, nc_pad - nc)))    # (e_pad, nc_pad)
    labels2d = labels.astype(jnp.int32).reshape(bs, 1)
    params = jnp.stack([jnp.float32(margin), jnp.float32(prev_s)])

    # VMEM budget: cosine cache + (double-buffered) weight tiles + features + epilogue temps.
    cache_bytes = n_tiles * bs * nc_tile * c_isz
    wtile_bytes = e_pad * nc_tile * mm_isz
    feat_bytes = bs * e_pad * mm_isz
    median_bytes = 4 * bs * bs * 4
    budget = cache_bytes + 3 * wtile_bytes + 2 * feat_bytes + median_bytes + (4 << 20)
    vmem_limit = int(min(max(budget, 32 << 20), 64 << 20))

    kernel = functools.partial(_adacos_margin_kernel, bs=bs, nc=nc, nc_tile=nc_tile)

    # Weight index_map: stream tiles j = 0..n_tiles-1 in phase 0, then pin to the
    # last tile for all of phase 1 -> no second HBM pass over the weight.
    def w_index_map(p, j):
        return (0, j * (1 - p) + (n_tiles - 1) * p)

    loss, s_new = pl.pallas_call(
        kernel,
        out_shape=(jax.ShapeDtypeStruct((1, 1), jnp.float32),
                   jax.ShapeDtypeStruct((1, 1), jnp.float32)),
        grid_spec=pltpu.PrefetchScalarGridSpec(
            num_scalar_prefetch=0,
            grid=(2, n_tiles),                                       # (phase, class tile)
            in_specs=[
                pl.BlockSpec(memory_space=pltpu.MemorySpace.SMEM),   # [margin, prev_s]
                pl.BlockSpec((bs, 1), lambda p, j: (0, 0)),          # labels
                pl.BlockSpec((bs, e_pad), lambda p, j: (0, 0)),      # features (resident)
                pl.BlockSpec((e_pad, nc_tile), w_index_map),         # streamed weight^T tile
            ],
            out_specs=(pl.BlockSpec(memory_space=pltpu.MemorySpace.SMEM),
                       pl.BlockSpec(memory_space=pltpu.MemorySpace.SMEM)),
            scratch_shapes=[
                pltpu.VMEM((n_tiles, bs, nc_tile), cache_dtype),  # cosine cache
                pltpu.VMEM((bs, 1), jnp.float32),   # t_acc : target cosine
                pltpu.VMEM((bs, 1), jnp.float32),   # b_acc : sum exp(prev_s*cos) (negatives)
                pltpu.VMEM((bs, 1), jnp.float32),   # m_acc : running row max (CE)
                pltpu.VMEM((bs, 1), jnp.float32),   # l_acc : running sum-exp (CE)
                pltpu.SMEM((1,), jnp.float32),      # s carried phase 0 -> phase 1
            ],
        ),
        compiler_params=pltpu.CompilerParams(
            # both axes carry sequential state (accumulators / phase dependence)
            dimension_semantics=("arbitrary", "arbitrary"),
            vmem_limit_bytes=vmem_limit,
        ),
    )(params, labels2d, f, w_t)
    return loss[0, 0], s_new[0, 0]


def adacos_margin_forward(features, weight, labels, *, margin=0.3, prev_s=10.0,
                          nc_tile=None, matmul_dtype=jnp.bfloat16,
                          cache_dtype=jnp.float32):
    """AdaCosMargin.forward — returns (loss, updated_prev_s).

    features: (bs, e), weight: (nc, e), labels: (bs,) int class ids.
    (If you have one-hot targets, pass labels = argmax(one_hot, -1).)
    """
    return _adacos_margin_impl(features, weight, labels, margin, prev_s,
                               nc_tile=nc_tile, matmul_dtype=matmul_dtype,
                               cache_dtype=cache_dtype)


def _reference(features, weight, labels, margin, prev_s):
    """Pure-JAX transcription of the PyTorch forward (for verification)."""
    w_n = weight / jnp.maximum(jnp.linalg.norm(weight, axis=-1, keepdims=True), 1e-12)
    cosine = features @ w_n.T
    bs, nc = cosine.shape
    yoh = jax.nn.one_hot(labels, nc, dtype=jnp.float32)
    B = jnp.sum(jnp.where(yoh == 0, jnp.exp(cosine * prev_s), 0.0)) / bs
    t = jnp.sum(cosine * yoh, axis=-1)
    med = jnp.sort(t)[(bs - 1) // 2]                    # torch.median (lower middle)
    theta = jnp.maximum(med, margin + 0.3)
    s = jnp.minimum(jnp.log(B) / (theta - margin), 25.0)
    logits = (cosine + margin * yoh) * s
    lse = jax.scipy.special.logsumexp(logits, axis=-1)
    loss = jnp.mean(lse - jnp.sum(yoh * logits, axis=-1))
    return loss, s


if __name__ == "__main__":
    # Small but non-aligned shapes: exercises E/NC padding and multi-tile NC.
    BS, E, NC = 8, 96, 300
    key = jax.random.PRNGKey(0)
    k1, k2, k3 = jax.random.split(key, 3)

    features = jax.random.normal(k1, (BS, E), jnp.float32)
    features = features / jnp.linalg.norm(features, axis=-1, keepdims=True)
    labels = jax.random.randint(k3, (BS,), 0, NC)

    # module init is zeros; use random prototypes and pull target prototypes
    # towards their features so the median/theta (unclamped) path is exercised.
    weight = 0.05 * jax.random.normal(k2, (NC, E), jnp.float32)
    weight = weight.at[labels].add(features)

    margin, prev_s = 0.3, 10.0

    # f32 matmul path, small class tile -> exercises multi-tile streaming, class
    # padding and the phase-0 -> phase-1 cosine-cache handoff.
    loss, s_new = adacos_margin_forward(features, weight, labels,
                                        margin=margin, prev_s=prev_s,
                                        nc_tile=128, matmul_dtype=jnp.float32)
    jax.block_until_ready((loss, s_new))
    ref_loss, ref_s = _reference(features, weight, labels, margin, prev_s)
    assert jnp.allclose(s_new, ref_s, rtol=1e-2, atol=1e-3), (s_new, ref_s)
    assert jnp.allclose(loss, ref_loss, rtol=5e-2, atol=5e-3), (loss, ref_loss)

    # bf16 MXU fast path with the default (large) class tile: loose numerical check.
    loss16, s16 = adacos_margin_forward(features, weight, labels,
                                        margin=margin, prev_s=prev_s,
                                        matmul_dtype=jnp.bfloat16)
    jax.block_until_ready((loss16, s16))
    assert bool(jnp.isfinite(loss16)) and bool(jnp.isfinite(s16))
    assert jnp.allclose(s16, ref_s, rtol=5e-2, atol=1e-2), (s16, ref_s)
    assert jnp.allclose(loss16, ref_loss, rtol=2e-1, atol=2e-2), (loss16, ref_loss)

    print("KERNEL_OK")
</pallas_src>

<mosaic_0001>
module attributes {stable_mosaic.version = 11 : i64} {
  func.func @_adacos_margin_kernel(%arg0: i32, %arg1: i32, %arg2: memref<2xf32, #tpu.memory_space<smem>>, %arg3: memref<8x1xi32, #tpu.memory_space<vmem>>, %arg4: memref<8x128xf32, #tpu.memory_space<vmem>>, %arg5: memref<128x128xf32, #tpu.memory_space<vmem>>, %arg6: memref<1x1xf32, #tpu.memory_space<smem>>, %arg7: memref<1x1xf32, #tpu.memory_space<smem>>, %arg8: memref<3x8x128xf32, #tpu.memory_space<vmem>>, %arg9: memref<8x1xf32, #tpu.memory_space<vmem>>, %arg10: memref<8x1xf32, #tpu.memory_space<vmem>>, %arg11: memref<8x1xf32, #tpu.memory_space<vmem>>, %arg12: memref<8x1xf32, #tpu.memory_space<vmem>>, %arg13: memref<1xf32, #tpu.memory_space<smem>>) attributes {dimension_semantics = [#tpu.dimension_semantics<arbitrary>, #tpu.dimension_semantics<arbitrary>], iteration_bounds = array<i64: 2, 3>, scalar_prefetch = 0 : i64, scratch_operands = 6 : i64, tpu.core_type = #tpu.core_type<tc>, window_params = [{transform_indices = @transform_0, window_bounds = array<i64: 2>}, {pipeline_mode = #tpu.pipeline_mode<synchronous>, transform_indices = @transform_1, window_bounds = array<i64: 8, 1>}, {pipeline_mode = #tpu.pipeline_mode<synchronous>, transform_indices = @transform_2, window_bounds = array<i64: 8, 128>}, {transform_indices = @transform_3, window_bounds = array<i64: 128, 128>}, {transform_indices = @transform_4, window_bounds = array<i64: 1, 1>}, {transform_indices = @transform_5, window_bounds = array<i64: 1, 1>}]} {
    %c0 = arith.constant 0 : index
    %0 = memref.load %arg2[%c0] : memref<2xf32, #tpu.memory_space<smem>>
    %c1 = arith.constant 1 : index
    %1 = memref.load %arg2[%c1] : memref<2xf32, #tpu.memory_space<smem>>
    %c128_i32 = arith.constant 128 : i32
    %2 = arith.muli %arg1, %c128_i32 : i32
    %3 = tpu.iota {dimensions = array<i32: 1>} : vector<8x128xi32>
    %4 = vector.broadcast %2 : i32 to vector<8x128xi32>
    %5 = arith.addi %4, %3 : vector<8x128xi32>
    %c300_i32 = arith.constant 300 : i32
    %6 = vector.broadcast %c300_i32 : i32 to vector<8x128xi32>
    %7 = arith.cmpi slt, %5, %6 : vector<8x128xi32>
    %c0_0 = arith.constant 0 : index
    %c0_1 = arith.constant 0 : index
    %8 = vector.load %arg3[%c0_0, %c0_1] : memref<8x1xi32, #tpu.memory_space<vmem>>, vector<8x1xi32>
    %9 = vector.broadcast %8 : vector<8x1xi32> to vector<8x128xi32>
    %10 = arith.cmpi eq, %9, %5 : vector<8x128xi32>
    %c0_i32 = arith.constant 0 : i32
    %11 = arith.cmpi eq, %arg0, %c0_i32 : i32
    %c0_i32_2 = arith.constant 0 : i32
    %12 = arith.cmpi eq, %arg1, %c0_i32_2 : i32
    %13 = arith.andi %11, %12 : i1
    %14 = arith.extui %13 : i1 to i32
    %c0_i32_3 = arith.constant 0 : i32
    %15 = arith.cmpi ne, %14, %c0_i32_3 : i32
    scf.if %15 {
      %cst = arith.constant 0.000000e+00 : f32
      %37 = vector.broadcast %cst : f32 to vector<8x1xf32>
      %c0_15 = arith.constant 0 : index
      %c0_16 = arith.constant 0 : index
      %38 = vector.load %arg9[%c0_15, %c0_16] : memref<8x1xf32, #tpu.memory_space<vmem>>, vector<8x1xf32>
      tpu.vector_store %arg9[%c0_15, %c0_16], %37 {strides = array<i32>} : memref<8x1xf32, #tpu.memory_space<vmem>>, vector<8x1xf32>,
      %cst_17 = arith.constant 0.000000e+00 : f32
      %39 = vector.broadcast %cst_17 : f32 to vector<8x1xf32>
      %c0_18 = arith.constant 0 : index
      %c0_19 = arith.constant 0 : index
      %40 = vector.load %arg10[%c0_18, %c0_19] : memref<8x1xf32, #tpu.memory_space<vmem>>, vector<8x1xf32>
      tpu.vector_store %arg10[%c0_18, %c0_19], %39 {strides = array<i32>} : memref<8x1xf32, #tpu.memory_space<vmem>>, vector<8x1xf32>,
    } else {
    }
    %c1_i32 = arith.constant 1 : i32
    %16 = arith.cmpi eq, %arg0, %c1_i32 : i32
    %c0_i32_4 = arith.constant 0 : i32
    %17 = arith.cmpi eq, %arg1, %c0_i32_4 : i32
    %18 = arith.andi %16, %17 : i1
    %19 = arith.extui %18 : i1 to i32
    %c0_i32_5 = arith.constant 0 : i32
    %20 = arith.cmpi ne, %19, %c0_i32_5 : i32
    scf.if %20 {
      %cst = arith.constant 0xFF800000 : f32
      %37 = vector.broadcast %cst : f32 to vector<8x1xf32>
      %c0_15 = arith.constant 0 : index
      %c0_16 = arith.constant 0 : index
      %38 = vector.load %arg11[%c0_15, %c0_16] : memref<8x1xf32, #tpu.memory_space<vmem>>, vector<8x1xf32>
      tpu.vector_store %arg11[%c0_15, %c0_16], %37 {strides = array<i32>} : memref<8x1xf32, #tpu.memory_space<vmem>>, vector<8x1xf32>,
      %cst_17 = arith.constant 0.000000e+00 : f32
      %39 = vector.broadcast %cst_17 : f32 to vector<8x1xf32>
      %c0_18 = arith.constant 0 : index
      %c0_19 = arith.constant 0 : index
      %40 = vector.load %arg12[%c0_18, %c0_19] : memref<8x1xf32, #tpu.memory_space<vmem>>, vector<8x1xf32>
      tpu.vector_store %arg12[%c0_18, %c0_19], %39 {strides = array<i32>} : memref<8x1xf32, #tpu.memory_space<vmem>>, vector<8x1xf32>,
    } else {
    }
    %c0_i32_6 = arith.constant 0 : i32
    %21 = arith.cmpi eq, %arg0, %c0_i32_6 : i32
    %22 = arith.extui %21 : i1 to i32
    %c0_i32_7 = arith.constant 0 : i32
    %23 = arith.cmpi ne, %22, %c0_i32_7 : i32
    scf.if %23 {
      %c0_15 = arith.constant 0 : index
      %c0_16 = arith.constant 0 : index
      %37 = vector.load %arg5[%c0_15, %c0_16] : memref<128x128xf32, #tpu.memory_space<vmem>>, vector<128x128xf32>
      %38 = arith.mulf %37, %37 : vector<128x128xf32>
      %cst = arith.constant dense<0.000000e+00> : vector<128xf32>
      %39 = vector.multi_reduction <add>, %38, %cst [0] : vector<128x128xf32> to vector<128xf32>
      %40 = vector.shape_cast %39 : vector<128xf32> to vector<1x128xf32>
      %cst_17 = arith.constant 1.000000e-24 : f32
      %41 = vector.broadcast %cst_17 : f32 to vector<1x128xf32>
      %42 = arith.addf %40, %41 : vector<1x128xf32>
      %43 = math.rsqrt %42 : vector<1x128xf32>
      %c0_18 = arith.constant 0 : index
      %c0_19 = arith.constant 0 : index
      %44 = vector.load %arg4[%c0_18, %c0_19] : memref<8x128xf32, #tpu.memory_space<vmem>>, vector<8x128xf32>
      %cst_20 = arith.constant dense<0.000000e+00> : vector<8x128xf32>
      %45 = tpu.matmul %44, %37, %cst_20 {dimension_numbers = #tpu.dot_dimension_numbers<[1], [0], [0], [1], [0, 0, 1, 1], [], []>} : vector<8x128xf32>, vector<128x128xf32>, vector<8x128xf32> -> vector<8x128xf32>
      %46 = vector.broadcast %43 : vector<1x128xf32> to vector<8x128xf32>
      %47 = arith.mulf %45, %46 : vector<8x128xf32>
      %48 = arith.index_cast %arg1 : i32 to index
      %c0_21 = arith.constant 0 : index
      %c0_22 = arith.constant 0 : index
      %49 = vector.load %arg8[%48, %c0_21, %c0_22] : memref<3x8x128xf32, #tpu.memory_space<vmem>>, vector<1x8x128xf32>
      %50 = vector.shape_cast %49 : vector<1x8x128xf32> to vector<8x128xf32>
      %51 = vector.shape_cast %47 : vector<8x128xf32> to vector<1x8x128xf32>
      tpu.vector_store %arg8[%48, %c0_21, %c0_22], %51 {strides = array<i32>} : memref<3x8x128xf32, #tpu.memory_space<vmem>>, vector<1x8x128xf32>,
      %cst_23 = arith.constant dense<true> : vector<8x128xi1>
      %52 = arith.xori %10, %cst_23 : vector<8x128xi1>
      %53 = arith.andi %7, %52 : vector<8x128xi1>
      %c0_24 = arith.constant 0 : index
      %c0_25 = arith.constant 0 : index
      %54 = vector.load %arg10[%c0_24, %c0_25] : memref<8x1xf32, #tpu.memory_space<vmem>>, vector<8x1xf32>
      %55 = vector.broadcast %1 : f32 to vector<8x128xf32>
      %56 = arith.mulf %55, %47 : vector<8x128xf32>
      %57 = math.exp %56 : vector<8x128xf32>
      %cst_26 = arith.constant 0.000000e+00 : f32
      %58 = vector.broadcast %cst_26 : f32 to vector<8x128xf32>
      %59 = arith.select %53, %57, %58 : vector<8x128xi1>, vector<8x128xf32>
      %cst_27 = arith.constant dense<0.000000e+00> : vector<8xf32>
      %60 = vector.multi_reduction <add>, %59, %cst_27 [1] : vector<8x128xf32> to vector<8xf32>
      %61 = vector.shape_cast %60 : vector<8xf32> to vector<8x1xf32>
      %62 = arith.addf %54, %61 : vector<8x1xf32>
      %c0_28 = arith.constant 0 : index
      %c0_29 = arith.constant 0 : index
      %63 = vector.load %arg10[%c0_28, %c0_29] : memref<8x1xf32, #tpu.memory_space<vmem>>, vector<8x1xf32>
      tpu.vector_store %arg10[%c0_28, %c0_29], %62 {strides = array<i32>} : memref<8x1xf32, #tpu.memory_space<vmem>>, vector<8x1xf32>,
      %c0_30 = arith.constant 0 : index
      %c0_31 = arith.constant 0 : index
      %64 = vector.load %arg9[%c0_30, %c0_31] : memref<8x1xf32, #tpu.memory_space<vmem>>, vector<8x1xf32>
      %cst_32 = arith.constant 0.000000e+00 : f32
      %65 = vector.broadcast %cst_32 : f32 to vector<8x128xf32>
      %66 = arith.select %10, %47, %65 : vector<8x128xi1>, vector<8x128xf32>
      %cst_33 = arith.constant dense<0.000000e+00> : vector<8xf32>
      %67 = vector.multi_reduction <add>, %66, %cst_33 [1] : vector<8x128xf32> to vector<8xf32>
      %68 = vector.shape_cast %67 : vector<8xf32> to vector<8x1xf32>
      %69 = arith.addf %64, %68 : vector<8x1xf32>
      %c0_34 = arith.constant 0 : index
      %c0_35 = arith.constant 0 : index
      %70 = vector.load %arg9[%c0_34, %c0_35] : memref<8x1xf32, #tpu.memory_space<vmem>>, vector<8x1xf32>
      tpu.vector_store %arg9[%c0_34, %c0_35], %69 {strides = array<i32>} : memref<8x1xf32, #tpu.memory_space<vmem>>, vector<8x1xf32>,
    } else {
    }
    %c0_i32_8 = arith.constant 0 : i32
    %24 = arith.cmpi eq, %arg0, %c0_i32_8 : i32
    %c2_i32 = arith.constant 2 : i32
    %25 = arith.cmpi eq, %arg1, %c2_i32 : i32
    %26 = arith.andi %24, %25 : i1
    %27 = arith.extui %26 : i1 to i32
    %c0_i32_9 = arith.constant 0 : i32
    %28 = arith.cmpi ne, %27, %c0_i32_9 : i32
    scf.if %28 {
      %c0_15 = arith.constant 0 : index
      %c0_16 = arith.constant 0 : index
      %37 = vector.load %arg9[%c0_15, %c0_16] : memref<8x1xf32, #tpu.memory_space<vmem>>, vector<8x1xf32>
      %c0_17 = arith.constant 0 : index
      %c0_18 = arith.constant 0 : index
      %38 = vector.load %arg10[%c0_17, %c0_18] : memref<8x1xf32, #tpu.memory_space<vmem>>, vector<8x1xf32>
      %39 = vector.shape_cast %38 : vector<8x1xf32> to vector<1x8x1xf32>
      %cst = arith.constant dense<0.000000e+00> : vector<1xf32>
      %40 = vector.multi_reduction <add>, %39, %cst [1, 2] : vector<1x8x1xf32> to vector<1xf32>
      %41 = vector.shape_cast %40 : vector<1xf32> to vector<1x1x1xf32>
      %42 = vector.extract %41[0, 0, 0] : f32 from vector<1x1x1xf32>
      %cst_19 = arith.constant 8.000000e+00 : f32
      %43 = arith.divf %42, %cst_19 : f32
      %cst_20 = arith.constant 1.000000e-30 : f32
      %44 = arith.maximumf %43, %cst_20 : f32
      %45 = tpu.iota {dimensions = array<i32: 0>} : vector<8x8xi32>
      %46 = tpu.iota {dimensions = array<i32: 1>} : vector<8x8xi32>
      %47 = arith.cmpi eq, %45, %46 : vector<8x8xi32>
      %cst_21 = arith.constant 0.000000e+00 : f32
      %48 = vector.shape_cast %37 : vector<8x1xf32> to vector<8x1xf32>
      %49 = vector.broadcast %48 : vector<8x1xf32> to vector<8x8xf32>
      %50 = vector.broadcast %cst_21 : f32 to vector<8x8xf32>
      %51 = arith.select %47, %49, %50 : vector<8x8xi1>, vector<8x8xf32>
      %cst_22 = arith.constant dense<0.000000e+00> : vector<8xf32>
      %52 = vector.multi_reduction <add>, %51, %cst_22 [0] : vector<8x8xf32> to vector<8xf32>
      %53 = vector.shape_cast %52 : vector<8xf32> to vector<1x8xf32>
      %54 = vector.broadcast %53 : vector<1x8xf32> to vector<8x8xf32>
      %55 = vector.broadcast %37 : vector<8x1xf32> to vector<8x8xf32>
      %56 = arith.cmpf olt, %54, %55 : vector<8x8xf32>
      %57 = arith.extui %56 : vector<8x8xi1> to vector<8x8xi32>
      %58 = arith.sitofp %57 : vector<8x8xi32> to vector<8x8xf32>
      %cst_23 = arith.constant dense<0.000000e+00> : vector<8xf32>
      %59 = vector.multi_reduction <add>, %58, %cst_23 [1] : vector<8x8xf32> to vector<8xf32>
      %60 = vector.shape_cast %59 : vector<8xf32> to vector<8x1xf32>
      %61 = vector.broadcast %53 : vector<1x8xf32> to vector<8x8xf32>
      %62 = vector.broadcast %37 : vector<8x1xf32> to vector<8x8xf32>
      %63 = arith.cmpf ole, %61, %62 : vector<8x8xf32>
      %64 = arith.extui %63 : vector<8x8xi1> to vector<8x8xi32>
      %65 = arith.sitofp %64 : vector<8x8xi32> to vector<8x8xf32>
      %cst_24 = arith.constant dense<0.000000e+00> : vector<8xf32>
      %66 = vector.multi_reduction <add>, %65, %cst_24 [1] : vector<8x8xf32> to vector<8xf32>
      %67 = vector.shape_cast %66 : vector<8xf32> to vector<8x1xf32>
      %cst_25 = arith.constant 3.000000e+00 : f32
      %68 = vector.broadcast %cst_25 : f32 to vector<8x1xf32>
      %69 = arith.cmpf ole, %60, %68 : vector<8x1xf32>
      %cst_26 = arith.constant 3.000000e+00 : f32
      %70 = vector.broadcast %cst_26 : f32 to vector<8x1xf32>
      %71 = arith.cmpf ogt, %67, %70 : vector<8x1xf32>
      %72 = arith.andi %69, %71 : vector<8x1xi1>
      %cst_27 = arith.constant 0xFF800000 : f32
      %73 = vector.broadcast %cst_27 : f32 to vector<8x1xf32>
      %74 = arith.select %72, %37, %73 : vector<8x1xi1>, vector<8x1xf32>
      %75 = vector.shape_cast %74 : vector<8x1xf32> to vector<1x8x1xf32>
      %cst_28 = arith.constant dense<0xFF800000> : vector<1xf32>
      %76 = vector.multi_reduction <maximumf>, %75, %cst_28 [1, 2] : vector<1x8x1xf32> to vector<1xf32>
      %77 = vector.shape_cast %76 : vector<1xf32> to vector<1x1x1xf32>
      %78 = vector.extract %77[0, 0, 0] : f32 from vector<1x1x1xf32>
      %cst_29 = arith.constant 3.000000e-01 : f32
      %79 = arith.addf %0, %cst_29 : f32
      %80 = arith.maximumf %78, %79 : f32
      %81 = math.log %44 : f32
      %82 = arith.subf %80, %0 : f32
      %83 = arith.divf %81, %82 : f32
      %cst_30 = arith.constant 2.500000e+01 : f32
      %84 = arith.minimumf %83, %cst_30 : f32
      %c0_31 = arith.constant 0 : index
      %85 = memref.load %arg13[%c0_31] : memref<1xf32, #tpu.memory_space<smem>>
      memref.store %84, %arg13[%c0_31] : memref<1xf32, #tpu.memory_space<smem>>
    } else {
    }
    %c1_i32_10 = arith.constant 1 : i32
    %29 = arith.cmpi eq, %arg0, %c1_i32_10 : i32
    %30 = arith.extui %29 : i1 to i32
    %c0_i32_11 = arith.constant 0 : i32
    %31 = arith.cmpi ne, %30, %c0_i32_11 : i32
    scf.if %31 {
      %c0_15 = arith.constant 0 : index
      %37 = memref.load %arg13[%c0_15] : memref<1xf32, #tpu.memory_space<smem>>
      %38 = arith.index_cast %arg1 : i32 to index
      %c0_16 = arith.constant 0 : index
      %c0_17 = arith.constant 0 : index
      %39 = vector.load %arg8[%38, %c0_16, %c0_17] : memref<3x8x128xf32, #tpu.memory_space<vmem>>, vector<1x8x128xf32>
      %40 = vector.shape_cast %39 : vector<1x8x128xf32> to vector<8x128xf32>
      %41 = arith.extui %10 : vector<8x128xi1> to vector<8x128xi32>
      %42 = arith.sitofp %41 : vector<8x128xi32> to vector<8x128xf32>
      %43 = vector.broadcast %0 : f32 to vector<8x128xf32>
      %44 = arith.mulf %43, %42 : vector<8x128xf32>
      %45 = arith.addf %40, %44 : vector<8x128xf32>
      %46 = vector.broadcast %37 : f32 to vector<8x128xf32>
      %47 = arith.mulf %45, %46 : vector<8x128xf32>
      %cst = arith.constant 0xFF800000 : f32
      %48 = vector.broadcast %cst : f32 to vector<8x128xf32>
      %49 = arith.select %7, %47, %48 : vector<8x128xi1>, vector<8x128xf32>
      %c0_18 = arith.constant 0 : index
      %c0_19 = arith.constant 0 : index
      %50 = vector.load %arg11[%c0_18, %c0_19] : memref<8x1xf32, #tpu.memory_space<vmem>>, vector<8x1xf32>
      %cst_20 = arith.constant dense<0xFF800000> : vector<8xf32>
      %51 = vector.multi_reduction <maximumf>, %49, %cst_20 [1] : vector<8x128xf32> to vector<8xf32>
      %52 = vector.shape_cast %51 : vector<8xf32> to vector<8x1xf32>
      %53 = arith.maximumf %50, %52 : vector<8x1xf32>
      %54 = arith.subf %50, %53 : vector<8x1xf32>
      %55 = math.exp %54 : vector<8x1xf32>
      %c0_21 = arith.constant 0 : index
      %c0_22 = arith.constant 0 : index
      %56 = vector.load %arg12[%c0_21, %c0_22] : memref<8x1xf32, #tpu.memory_space<vmem>>, vector<8x1xf32>
      %57 = arith.mulf %56, %55 : vector<8x1xf32>
      %58 = vector.broadcast %53 : vector<8x1xf32> to vector<8x128xf32>
      %59 = arith.subf %49, %58 : vector<8x128xf32>
      %60 = math.exp %59 : vector<8x128xf32>
      %cst_23 = arith.constant dense<0.000000e+00> : vector<8xf32>
      %61 = vector.multi_reduction <add>, %60, %cst_23 [1] : vector<8x128xf32> to vector<8xf32>
      %62 = vector.shape_cast %61 : vector<8xf32> to vector<8x1xf32>
      %63 = arith.addf %57, %62 : vector<8x1xf32>
      %c0_24 = arith.constant 0 : index
      %c0_25 = arith.constant 0 : index
      %64 = vector.load %arg12[%c0_24, %c0_25] : memref<8x1xf32, #tpu.memory_space<vmem>>, vector<8x1xf32>
      tpu.vector_store %arg12[%c0_24, %c0_25], %63 {strides = array<i32>} : memref<8x1xf32, #tpu.memory_space<vmem>>, vector<8x1xf32>,
      %c0_26 = arith.constant 0 : index
      %c0_27 = arith.constant 0 : index
      %65 = vector.load %arg11[%c0_26, %c0_27] : memref<8x1xf32, #tpu.memory_space<vmem>>, vector<8x1xf32>
      tpu.vector_store %arg11[%c0_26, %c0_27], %53 {strides = array<i32>} : memref<8x1xf32, #tpu.memory_space<vmem>>, vector<8x1xf32>,
    } else {
    }
    %c1_i32_12 = arith.constant 1 : i32
    %32 = arith.cmpi eq, %arg0, %c1_i32_12 : i32
    %c2_i32_13 = arith.constant 2 : i32
    %33 = arith.cmpi eq, %arg1, %c2_i32_13 : i32
    %34 = arith.andi %32, %33 : i1
    %35 = arith.extui %34 : i1 to i32
    %c0_i32_14 = arith.constant 0 : i32
    %36 = arith.cmpi ne, %35, %c0_i32_14 : i32
    scf.if %36 {
      %c0_15 = arith.constant 0 : index
      %37 = memref.load %arg13[%c0_15] : memref<1xf32, #tpu.memory_space<smem>>
      %c0_16 = arith.constant 0 : index
      %c0_17 = arith.constant 0 : index
      %38 = vector.load %arg11[%c0_16, %c0_17] : memref<8x1xf32, #tpu.memory_space<vmem>>, vector<8x1xf32>
      %c0_18 = arith.constant 0 : index
      %c0_19 = arith.constant 0 : index
      %39 = vector.load %arg12[%c0_18, %c0_19] : memref<8x1xf32, #tpu.memory_space<vmem>>, vector<8x1xf32>
      %40 = math.log %39 : vector<8x1xf32>
      %41 = arith.addf %38, %40 : vector<8x1xf32>
      %c0_20 = arith.constant 0 : index
      %c0_21 = arith.constant 0 : index
      %42 = vector.load %arg9[%c0_20, %c0_21] : memref<8x1xf32, #tpu.memory_space<vmem>>, vector<8x1xf32>
      %43 = vector.broadcast %0 : f32 to vector<8x1xf32>
      %44 = arith.addf %42, %43 : vector<8x1xf32>
      %45 = vector.broadcast %37 : f32 to vector<8x1xf32>
      %46 = arith.mulf %44, %45 : vector<8x1xf32>
      %47 = arith.subf %41, %46 : vector<8x1xf32>
      %48 = vector.shape_cast %47 : vector<8x1xf32> to vector<1x8x1xf32>
      %cst = arith.constant dense<0.000000e+00> : vector<1xf32>
      %49 = vector.multi_reduction <add>, %48, %cst [1, 2] : vector<1x8x1xf32> to vector<1xf32>
      %50 = vector.shape_cast %49 : vector<1xf32> to vector<1x1x1xf32>
      %51 = vector.extract %50[0, 0, 0] : f32 from vector<1x1x1xf32>
      %cst_22 = arith.constant 8.000000e+00 : f32
      %52 = arith.divf %51, %cst_22 : f32
      %c0_23 = arith.constant 0 : index
      %c0_24 = arith.constant 0 : index
      %53 = memref.load %arg6[%c0_23, %c0_24] : memref<1x1xf32, #tpu.memory_space<smem>>
      memref.store %52, %arg6[%c0_23, %c0_24] : memref<1x1xf32, #tpu.memory_space<smem>>
      %c0_25 = arith.constant 0 : index
      %c0_26 = arith.constant 0 : index
      %54 = memref.load %arg7[%c0_25, %c0_26] : memref<1x1xf32, #tpu.memory_space<smem>>
      memref.store %37, %arg7[%c0_25, %c0_26] : memref<1x1xf32, #tpu.memory_space<smem>>
    } else {
    }
    return
  }
  func.func @transform_0(%arg0: i32, %arg1: i32) -> i32 {
    %c0_i32 = arith.constant 0 : i32
    %c0_i32_0 = arith.constant 0 : i32
    return %c0_i32 : i32
  }
  func.func @transform_1(%arg0: i32, %arg1: i32) -> (i32, i32) {
    %c0_i32 = arith.constant 0 : i32
    %c0_i32_0 = arith.constant 0 : i32
    %c0_i32_1 = arith.constant 0 : i32
    return %c0_i32, %c0_i32_0 : i32, i32
  }
  func.func @transform_2(%arg0: i32, %arg1: i32) -> (i32, i32) {
    %c0_i32 = arith.constant 0 : i32
    %c0_i32_0 = arith.constant 0 : i32
    %c0_i32_1 = arith.constant 0 : i32
    return %c0_i32, %c0_i32_0 : i32, i32
  }
  func.func @transform_3(%arg0: i32, %arg1: i32) -> (i32, i32) {
    %c1_i32 = arith.constant 1 : i32
    %0 = arith.subi %c1_i32, %arg0 : i32
    %1 = arith.muli %arg1, %0 : i32
    %c2_i32 = arith.constant 2 : i32
    %2 = arith.muli %c2_i32, %arg0 : i32
    %3 = arith.addi %1, %2 : i32
    %c0_i32 = arith.constant 0 : i32
    %c0_i32_0 = arith.constant 0 : i32
    return %c0_i32, %3 : i32, i32
  }
  func.func @transform_4(%arg0: i32, %arg1: i32) -> (i32, i32) {
    %c0_i32 = arith.constant 0 : i32
    %c0_i32_0 = arith.constant 0 : i32
    %c0_i32_1 = arith.constant 0 : i32
    return %c0_i32, %c0_i32_0 : i32, i32
  }
  func.func @transform_5(%arg0: i32, %arg1: i32) -> (i32, i32) {
    %c0_i32 = arith.constant 0 : i32
    %c0_i32_0 = arith.constant 0 : i32
    %c0_i32_1 = arith.constant 0 : i32
    return %c0_i32, %c0_i32_0 : i32, i32
  }
}

</mosaic_0001>

<bundles_post_ra>
// kernel: _adacos_margin_impl.1
= control target key start
LH: loop header
LB: loop body
LE: loop exit
PB: predicated region body
PF: predicated region fallthrough
CT: control target
= control target key end

     0   :  { %11 = vsyncpa [#allocation10], 0  ;;  %s1400_s0 = inlined_call_operand.vmem [shape: f32[2], index: 0, kind: input, shape index: {}]   ;;  %s1401_s1 = inlined_call_operand.vmem [shape: s32[8,1], index: 1, kind: input, shape index: {}]   ;;  %s1402_s2 = inlined_call_operand.vmem [shape: f32[8,128], index: 2, kind: input, shape index: {}]   ;;  %s1403_s3 = inlined_call_operand.vmem [shape: f32[128,384], index: 3, kind: input, shape index: {}]   ;;  %s1404_s4 = inlined_call_operand.hbm [shape: f32[1,1], index: 4, kind: output, shape index: {0}]   ;;  %s1405_s5 = inlined_call_operand.hbm [shape: f32[1,1], index: 5, kind: output, shape index: {1}]  }
   0x1   :  { %12 = vsyncpa [#allocation9], 0 }
   0x2   :  { %13 = vsyncpa [#allocation14], 0  ;;  %s1130_s18 = smov 0   ;;  %s1132_s19 = smov 0  }
   0x3   :  { %s1134_s20 = smov 0   ;;  %s1136_s21 = smov 0  }
   0x4   :  { %s1138_s22 = smov 0   ;;  %s1140_s23 = smov 0  }
   0x5   :  { %s1142_s24 = smov 0  }
   0x6 LB: > { %s781_s25 = sadd.s32 4294967295, %s1082_s24   ;;  %s28_s26 = sadd.s32 1, %s1074_s22  ;;  %s1082_s24 = sphi %s1142_s24, %s19_s24   ;;  %s1078_s23 = sphi %s1140_s23, %s1415_s23   ;;  %s1074_s22 = sphi %s1138_s22, %s1414_s22   ;;  %s1070_s21 = sphi %s1136_s21, %s1413_s21   ;;  %s1066_s20 = sphi %s1134_s20, %s1412_s20   ;;  %s1062_s19 = sphi %s1132_s19, %s1411_s19   ;;  %s1058_s18 = sphi %s1130_s18, %s1410_s18  }
   0x7   : > { %p29_p0 = scmp.ge.s32.totalorder %s28_s26, 3  ;;  %s31_s27 = sadd.s32 1, %s1078_s23 }
   0x8   : > { %s98_s28 = ssub.s32 1, %s1078_s23  ;;  %s782_s29 = sshll.u32 %s1078_s23, 1 }
   0x9   : > { %s1417_s26 = smov (%p29_p0, %s28_s26), 0  ;;  %s1419_s27 = smov (!%p29_p0, %s31_s27), %s1078_s23 }
   0xa   : > { %s99_s30 = smul.u32 %s1074_s22, %s98_s28  ;;  %s109_s6 = sadd.s32 1, %s1062_s19 }
   0xb   : > { %p33_p1 = scmp.ge.s32.totalorder %s1419_s27, 2  ;;  %p116_p2 = scmp.ne.s32.totalorder %s1062_s19, %s1058_s18 }
   0xc   : > { %s1177_s7 = sadd.s32 %s782_s29, %s99_s30  ;;  %p117_p3 = scmp.eq.s32.totalorder %s1082_s24, 0 }
   0xd   : > { %s1421_s27 = smov (%p33_p1, %s1419_s27), 0  ;;  %p784_p5 = scmp.ge.s32.totalorder %s1082_s24, 1 }
   0xe   : > { %p1182_p4 = por %p117_p3, %p116_p2  ;;  %s102_s9 = ssub.s32 1, %s1421_s27 }
   0xf   : > { %s783_s10 = sshll.u32 %s1421_s27, 1  ;;  %s103_s11 = smul.u32 %s102_s9, %s1417_s26 }
  0x10   : > { %s1406_s8 = scalar_select %p1182_p4, 1, 0 }
  0x11   : > { %p175_p6 = scmp.lt.s32.totalorder %s1082_s24, 7  ;;  %p1193_p7 = scmp.eq.s32.totalorder %s781_s25, 0 }
  0x12   : > { %s105_s13 = sadd.s32 %s783_s10, %s103_s11  ;;  %s188_s28 = sshll.u32 %s1400_s0, 4  ;;  %s189_s28 = int_to_ptr.vmem [resolvable:$true] %s188_s28 }
  0x13   : > { %p1197_p8 = pnand %p784_p5, %p175_p6  ;;  %s106_s15 = ssub.s32 %s1177_s7, %s105_s13 }
  0x14   : > { %p107_p9 = scmp.eq.s32.totalorder %s106_s15, 0  ;;  %s981_s30 = scalar_lea.vmem %s189_s28, 16 }
  0x15   : > { %p882_p10 = pneg %p1197_p8  ;;  %p982_p12 = scmp.ne.s32.totalorder %s189_s28, %s981_s30 }
  0x16   : > { %s1208_s29 = scalar_select %p107_p9, %s1062_s19, %s109_s6  }
  0x17   : > { %p883_p11 = pnand %p1193_p7, %p882_p10  ;;  %p989_p2 = scmp.lt.s32.totalorder %s189_s28, %s189_s28 }
  0x18   : > { %p990_p3 = scmp.lt.s32.totalorder %s981_s30, %s981_s30 }
  0x19   : > { %p983_p13 = pneg %p883_p11 }
  0x1a   : > { %p991_p5 = por %p990_p3, %p989_p2 }
  0x1b   : > { %p984_p0 = pnand %p983_p13, %p982_p12 }
  0x1d   : > { %p985_p1 = pneg %p984_p0 }
  0x1f   : > { %p992_p6 = pnand %p991_p5, %p985_p1 }
  0x21   : > { %995 = shalt.err (!%p992_p6)
}
  0x22   : > { %s1084_s9 = smov [#allocation8]   ;;  %p786_p4 = scmp.ge.s32.totalorder %s1082_s24, 6 }
  0x23   : > { %885 = dma.vmem_to_smem (!%p883_p11), %s189_s28, 16, %s1084_s9, [#allocation10]  }
  0x24   : > { %201 = sbr.rel (%p786_p4) target bundleno = 53 (0x35), region = 28  ;;  %p1409_p9 = scmp.ne.s32.totalorder (!%p786_p4), %s1406_s8, 0 }
  0x29   : > { %204 = sbr.rel (!%p1409_p9) target bundleno = 53 (0x35), region = 32  ;;  %s206_s6 = sand.u32 (%p1409_p9), 1, %s1062_s19  }
  0x2a   : > { %s789_s10 = sshll.u32 (%p1409_p9), %s1177_s7, 3  ;;  %s787_s11 = sshll.u32 (%p1409_p9), %s206_s6, 7 }
  0x2b   : > { %s1220_s16 = scalar_lea.vmem (%p1409_p9), %s1403_s3, %s789_s10  ;;  %s208_s8 = scalar_lea.vmem (%p1409_p9), [#allocation11], %s787_s11 }
  0x2c   : > { %v273_v0 = vld [vmem:[%s1220_s16] sm:$0xff] (%p1409_p9)  ;;  %v275_v1 = vld [vmem:[%s1220_s16 + $0x18] sm:$0xff] (%p1409_p9)  ;;  %v277_v2 = vld [vmem:[%s1220_s16 + $0x30] sm:$0xff] (%p1409_p9) }
  0x2d   : > { %274 = vst [vmem:[%s208_s8] sm:$0xff] (%p1409_p9), %v273_v0  ;;  %276 = vst [vmem:[%s208_s8 + $0x8] sm:$0xff] (%p1409_p9), %v275_v1  ;;  %v279_v3 = vld [vmem:[%s1220_s16 + $0x48] sm:$0xff] (%p1409_p9)  ;;  %v281_v4 = vld [vmem:[%s1220_s16 + $0x60] sm:$0xff] (%p1409_p9) }
  0x2e   : > { %278 = vst [vmem:[%s208_s8 + $0x10] sm:$0xff] %v277_v2  ;;  %v283_v5 = vld [vmem:[%s1220_s16 + $0x78] sm:$0xff]  ;;  %280 = vst [vmem:[%s208_s8 + $0x18] sm:$0xff] %v279_v3  ;;  %v285_v6 = vld [vmem:[%s1220_s16 + $0x90] sm:$0xff] }
  0x2f   : > { %282 = vst [vmem:[%s208_s8 + $0x20] sm:$0xff] %v281_v4  ;;  %284 = vst [vmem:[%s208_s8 + $0x28] sm:$0xff] %v283_v5  ;;  %v287_v7 = vld [vmem:[%s1220_s16 + $0xa8] sm:$0xff]  ;;  %v289_v8 = vld [vmem:[%s1220_s16 + $0xc0] sm:$0xff] }
  0x30   : > { %286 = vst [vmem:[%s208_s8 + $0x30] sm:$0xff] %v285_v6  ;;  %288 = vst [vmem:[%s208_s8 + $0x38] sm:$0xff] %v287_v7  ;;  %v291_v9 = vld [vmem:[%s1220_s16 + $0xd8] sm:$0xff]  ;;  %v293_v10 = vld [vmem:[%s1220_s16 + $0xf0] sm:$0xff] }
  0x31   : > { %290 = vst [vmem:[%s208_s8 + $0x40] sm:$0xff] %v289_v8  ;;  %v295_v11 = vld [vmem:[%s1220_s16 + $0x108] sm:$0xff]  ;;  %292 = vst [vmem:[%s208_s8 + $0x48] sm:$0xff] %v291_v9  ;;  %v297_v12 = vld [vmem:[%s1220_s16 + $0x120] sm:$0xff] }
  0x32   : > { %294 = vst [vmem:[%s208_s8 + $0x50] sm:$0xff] %v293_v10  ;;  %296 = vst [vmem:[%s208_s8 + $0x58] sm:$0xff] %v295_v11  ;;  %v299_v13 = vld [vmem:[%s1220_s16 + $0x138] sm:$0xff]  ;;  %v301_v14 = vld [vmem:[%s1220_s16 + $0x150] sm:$0xff] }
  0x33   : > { %298 = vst [vmem:[%s208_s8 + $0x60] sm:$0xff] %v297_v12  ;;  %300 = vst [vmem:[%s208_s8 + $0x68] sm:$0xff] %v299_v13  ;;  %v303_v15 = vld [vmem:[%s1220_s16 + $0x168] sm:$0xff] }
  0x34   : > { %302 = vst [vmem:[%s208_s8 + $0x70] sm:$0xff] %v301_v14  ;;  %304 = vst [vmem:[%s208_s8 + $0x78] sm:$0xff] %v303_v15 }
  0x35 PF: > { %313 = sbr.rel (%p1197_p8) target bundleno = 1848 (0x738), region = 70 }
  0x3a   : > { %1045 = dma.done.wait (%p1193_p7), [#allocation10], 16  }
  0x3b   : > { %1047 = vsyncadd (%p1193_p7), [#allocation10], 4294967280  ;;  %s320_s7 = sand.u32 1, %s1058_s18  }
  0x3c   : > { %s792_s17 = sshll.u32 %s320_s7, 7 }
  0x3d   : > { %s1245_s28 = scalar_lea.vmem [#allocation11], %s792_s17 }
  0x3e   : > { %326 = sfence }
  0x3f   : > { %v355_v16 = vld [vmem:[%s1401_s1] sm:$0xff]  ;;  %s794_s14 = sshll.u32 %s1066_s20, 7  ;;  %v350_v17 = vlaneseq  ;;  %s1251_s6 = sld [smem:[#allocation8]]  ;;  %v1085_v18 = vmov 0  }
  0x40   : > { %964 = vset.pattern.permute.xlu0 %v1085_v18  ;;  %v352_v19 = vstv %s794_s14  ;;  %s1253_s18 = sld [smem:[#allocation8 + $0x1]]  ;;  %p360_p4 = scmp.eq.s32.totalorder %s1070_s21, 0 }
  0x41   : > { %357 = vperm.xlu0 %964, %v355_v16   ;;  %v1257_v20 = vand.u32 127, %v350_v17  ;;  %p361_p7 = scmp.eq.s32.totalorder %s1066_s20, 0 }
  0x43   : > { %v1261_v21 = vadd.s32 %v352_v19, %v1257_v20  ;;  %p362_p8 = pnand %p361_p7, %p360_p4 }
  0x45   : > { %vm354_vm0 = vcmp.lt.s32.totalorder %v1261_v21, 300 }
  0xb9   : > { %365 = sbr.rel (%p362_p8) target bundleno = 192 (0xc0), region = 82 }
  0xbc   : > { %v1268_v22 = vpop.permute.xlu0 %357 }
  0xbd   : > { %vm359_vm1 = vcmp.eq.s32.totalorder %v1268_v22, %v1261_v21 }
  0xbe   : > { %vm366_vm2 = vcmask 7168   ;;  %v1086_v23 = vmov 0.0  }
  0xbf   : > { %367 = vst.msk [vmem:[#allocation3] sm:$0xff] %vm366_vm2, %v1086_v23  ;;  %368 = vst.msk [vmem:[#allocation4] sm:$0xff] %vm366_vm2, %v1086_v23 }
  0xc0 PF: > { %p369_p10 = scmp.eq.s32.totalorder %s1070_s21, 1 }
  0xc2   : > { %p370_p11 = pnand %p369_p10, %p361_p7 }
  0xc4   : > { %373 = sbr.rel (%p370_p11) target bundleno = 203 (0xcb), region = 86 }
  0xc9   : > { %vm374_vm3 = vcmask 7168   ;;  %v1087_v24 = vmov -inf   ;;  %v1088_v25 = vmov 0.0  }
  0xca   : > { %375 = vst.msk [vmem:[#allocation5] sm:$0xff] %vm374_vm3, %v1087_v24  ;;  %376 = vst.msk [vmem:[#allocation6] sm:$0xff] %vm374_vm3, %v1088_v25 }
  0xcb PF: > { %p795_p12 = scmp.ne.s32.totalorder %s1070_s21, 0 }
  0xcc   : > { %s796_s11 = sshll.u32 (!%p795_p12), %s1066_s20, 3 }
  0xcd   : > { %379 = sbr.rel (%p795_p12) target bundleno = 602 (0x25a), region = 90  ;;  %s508_s13 = scalar_lea.vmem (!%p795_p12), [#allocation2], %s796_s11 }
  0xd2   : > { %v1279_v26 = vld [vmem:[%s1245_s28 + $0x78] sm:$0xff]  ;;  %v1089_v27 = vmov 0.0   ;;  %v1283_v28 = vld [vmem:[%s1245_s28 + $0x70] sm:$0xff]  ;;  %vm1090_vm4 = vmmov 0   ;;  %v393_v29 = vld [vmem:[%s1245_s28 + $0x68] sm:$0xff]  ;;  %v513_v24 = vstv %s1253_s18  ;;  %vm1091_vm5 = vmmov 1  }
  0xd3   : > { %825 = vmatprep.subr.mxu0 %v1089_v27  ;;  %857 = vmatprep.mubr.msk.f32.mxu0 %vm1090_vm4, %v1089_v27  ;;  %v1291_v30 = vld [vmem:[%s1245_s28 + $0x8] sm:$0xff]  ;;  %v392_v31 = vld [vmem:[%s1245_s28 + $0x60] sm:$0xff]  ;;  %v382_v32 = vld [vmem:[%s1245_s28 + $0x10] sm:$0xff]  ;;  %v409_v2 = vmul.f32 %v393_v29, %v393_v29  ;;  %v410_v4 = vmul.f32 %v1283_v28, %v1283_v28  ;;  %v411_v7 = vmul.f32 %v1279_v26, %v1279_v26  ;;  %vm521_vm8 = vcmask 7168  }
  0xd4   : > { %826 = vmatpush3.msra.mxu0 %v1279_v26  ;;  %v397_v33 = vmul.f32 %v1291_v30, %v1291_v30  ;;  %v1299_v34 = vld [vmem:[%s1245_s28] sm:$0xff]  ;;  %v398_v35 = vmul.f32 %v382_v32, %v382_v32  ;;  %v391_v37 = vld [vmem:[%s1245_s28 + $0x58] sm:$0xff]  ;;  %v390_v41 = vld [vmem:[%s1245_s28 + $0x50] sm:$0xff]  ;;  %v408_v0 = vmul.f32 %v392_v31, %v392_v31 }
  0xd5   : > { %827 = vmatprep.subr.mxu0 %v1089_v27  ;;  %v396_v36 = vmul.f32 %v1299_v34, %v1299_v34  ;;  %v383_v38 = vld [vmem:[%s1245_s28 + $0x18] sm:$0xff]  ;;  %v384_v42 = vld [vmem:[%s1245_s28 + $0x20] sm:$0xff]  ;;  %v389_v45 = vld [vmem:[%s1245_s28 + $0x48] sm:$0xff]  ;;  %v406_v60 = vmul.f32 %v390_v41, %v390_v41  ;;  %v407_v62 = vmul.f32 %v391_v37, %v391_v37 }
  0xd6   : > { %828 = vmatpush3.msra.mxu0 %v1283_v28  ;;  %v399_v39 = vmul.f32 %v383_v38, %v383_v38  ;;  %v400_v43 = vmul.f32 %v384_v42, %v384_v42  ;;  %v385_v46 = vld [vmem:[%s1245_s28 + $0x28] sm:$0xff]  ;;  %v388_v49 = vld [vmem:[%s1245_s28 + $0x40] sm:$0xff]  ;;  %v386_v50 = vld [vmem:[%s1245_s28 + $0x30] sm:$0xff]  ;;  %v405_v58 = vmul.f32 %v389_v45, %v389_v45 }
  0xd7   : > { %829 = vmatprep.subr.mxu0 %v1089_v27  ;;  %v412_v40 = vadd.f32 %v397_v33, %v396_v36  ;;  %v401_v47 = vmul.f32 %v385_v46, %v385_v46  ;;  %v402_v51 = vmul.f32 %v386_v50, %v386_v50  ;;  %v387_v53 = vld [vmem:[%s1245_s28 + $0x38] sm:$0xff]  ;;  %v404_v56 = vmul.f32 %v388_v49, %v388_v49  ;;  %v435_v6 = vld [vmem:[%s1402_s2] sm:$0xff]  ;;  %vm510_vm6 = vmxor %vm359_vm1, %vm1091_vm5 }
  0xd8   : > { %830 = vmatpush3.msra.mxu0 %v393_v29  ;;  %v403_v54 = vmul.f32 %v387_v53, %v387_v53  ;;  %vm511_vm7 = vmand %vm354_vm0, %vm510_vm6 }
  0xd9   : > { %831 = vmatprep.subr.mxu0 %v1089_v27  ;;  %v413_v44 = vadd.f32 %v412_v40, %v398_v35  ;;  %v523_v35 = vld [vmem:[#allocation3] sm:$0xff] }
  0xda   : > { %832 = vmatpush3.msra.mxu0 %v392_v31 }
  0xdb   : > { %833 = vmatprep.subr.mxu0 %v1089_v27  ;;  %v414_v48 = vadd.f32 %v413_v44, %v399_v39 }
  0xdc   : > { %834 = vmatpush3.msra.mxu0 %v391_v37 }
  0xdd   : > { %835 = vmatprep.subr.mxu0 %v1089_v27  ;;  %v415_v52 = vadd.f32 %v414_v48, %v400_v43 }
  0xde   : > { %836 = vmatpush3.msra.mxu0 %v390_v41 }
  0xdf   : > { %837 = vmatprep.subr.mxu0 %v1089_v27  ;;  %v416_v55 = vadd.f32 %v415_v52, %v401_v47 }
  0xe0   : > { %838 = vmatpush3.msra.mxu0 %v389_v45 }
  0xe1   : > { %839 = vmatprep.subr.mxu0 %v1089_v27  ;;  %v417_v57 = vadd.f32 %v416_v55, %v402_v51 }
  0xe2   : > { %840 = vmatpush3.msra.mxu0 %v388_v49 }
  0xe3   : > { %841 = vmatprep.subr.mxu0 %v1089_v27  ;;  %v418_v59 = vadd.f32 %v417_v57, %v403_v54 }
  0xe4   : > { %842 = vmatpush3.msra.mxu0 %v387_v53 }
  0xe5   : > { %843 = vmatprep.subr.mxu0 %v1089_v27  ;;  %v419_v61 = vadd.f32 %v418_v59, %v404_v56 }
  0xe6   : > { %844 = vmatpush3.msra.mxu0 %v386_v50 }
  0xe7   : > { %845 = vmatprep.subr.mxu0 %v1089_v27  ;;  %v420_v63 = vadd.f32 %v419_v61, %v405_v58 }
  0xe8   : > { %846 = vmatpush3.msra.mxu0 %v385_v46 }
  0xe9   : > { %847 = vmatprep.subr.mxu0 %v1089_v27  ;;  %v421_v1 = vadd.f32 %v420_v63, %v406_v60 }
  0xea   : > { %848 = vmatpush3.msra.mxu0 %v384_v42 }
  0xeb   : > { %849 = vmatprep.subr.mxu0 %v1089_v27  ;;  %v422_v3 = vadd.f32 %v421_v1, %v407_v62 }
  0xec   : > { %850 = vmatpush3.msra.mxu0 %v383_v38 }
  0xed   : > { %851 = vmatprep.subr.mxu0 %v1089_v27  ;;  %v423_v5 = vadd.f32 %v422_v3, %v408_v0 }
  0xee   : > { %852 = vmatpush3.msra.mxu0 %v382_v32  ;;  %v512_v32 = vld [vmem:[#allocation4] sm:$0xff] }
  0xef   : > { %853 = vmatprep.subr.mxu0 %v1089_v27  ;;  %v424_v8 = vadd.f32 %v423_v5, %v409_v2 }
  0xf0   : > { %854 = vmatpush3.msra.mxu0 %v1291_v30 }
  0xf1   : > { %855 = vmatprep.subr.mxu0 %v1089_v27  ;;  %v425_v9 = vadd.f32 %v424_v8, %v410_v4 }
  0xf2   : > { %856 = vmatpush3.msra.mxu0 %v1299_v34 }
  0xf3   : > { %858 = vmatmul.mubr.f32.vlgmr.msra.gmra.mxu0 %v435_v6  ;;  %v426_v10 = vadd.f32 %v425_v9, %v411_v7 }
  0xf5   : > { %v427_v11 = vrot.slane %v426_v10, 4 }
  0xf7   : > { %v428_v12 = vadd.f32 %v427_v11, %v426_v10 }
  0xf9   : > { %v429_v13 = vrot.slane %v428_v12, 2 }
  0xfb   : > { %v430_v14 = vadd.f32 %v429_v13, %v428_v12 }
  0xfd   : > { %v431_v15 = vrot.slane %v430_v14, 1 }
  0xff   : > { %v432_v16 = vadd.f32 %v431_v15, %v430_v14 }
 0x101   : > { %v433_v18 = vadd.f32 1e-24, %v432_v16 }
 0x103   : > { %965 = vrsqrt.f32 %v433_v18 }
 0x110   : > { %v966_v19 = vpop.eup %965 }
 0x1b3   : > { %v502_v23 = vpop.f32.mrf.mxu0 }
 0x1b4   : > { %v506_v25 = vmul.f32 %v966_v19, %v502_v23 }
 0x1b5   : > { %v859_v26 = vpop.f32.mrf.mxu0 }
 0x1b6   : > { %509 = vst [vmem:[%s508_s13] sm:$0xff] %v506_v25  ;;  %v514_v27 = vmul.f32 %v513_v24, %v506_v25  ;;  %v524_v31 = vsel %vm359_vm1, %v506_v25, 0.0 }
 0x1b8   : > { %v515_v28 = vmul.f32 1.442695, %v514_v27 }
 0x1ba   : > { %967 = vpow2.f32 %v515_v28 }
 0x1c7   : > { %v968_v29 = vpop.eup %967 }
 0x1c8   : > { %v517_v30 = vsel %vm511_vm7, %v968_v29, 0.0 }
 0x1c9   : > { %518 = vadd.xlane.f32.xlu0 %v517_v30 }
 0x1cd   : > { %525 = vadd.xlane.f32.xlu0 %v524_v31 }
 0x252   : > { %v519_v33 = vpop.xlane.xlu0 %518 }
 0x253   : > { %v520_v34 = vadd.f32 %v519_v33, %v512_v32 }
 0x255   : > { %522 = vst.msk [vmem:[#allocation4] sm:$0xff] %vm521_vm8, %v520_v34 }
 0x256   : > { %v526_v36 = vpop.xlane.xlu0 %525 }
 0x257   : > { %v527_v37 = vadd.f32 %v526_v36, %v523_v35 }
 0x259   : > { %528 = vst.msk [vmem:[#allocation3] sm:$0xff] %vm521_vm8, %v527_v37 }
 0x25a PF: > { %p529_p13 = scmp.eq.s32.totalorder %s1066_s20, 2 }
 0x25c   : > { %p530_p0 = pnand %p529_p13, %p360_p4 }
 0x25d   : > { %s1094_s8 = smov (!%p530_p0), 1e-30   ;;  %s594_s17 = sadd.f32 (!%p530_p0), 0.3, %s1251_s6 }
 0x25e   : > { %533 = sbr.rel (%p530_p0) target bundleno = 1168 (0x490), region = 94  ;;  %s1095_s10 = smov (!%p530_p0), 25.0  }
 0x263   : > { %v534_v38 = vld [vmem:[#allocation3] sm:$0xff]  ;;  %v1092_v39 = vmov 0   ;;  %v552_v40 = vshrl.u32 %v350_v17, 7  ;;  %vm560_vm10 = vcmask 64512   ;;  %v1093_v50 = vmov 0.0   ;;  %v535_v53 = vld [vmem:[#allocation4] sm:$0xff] }
 0x264   : > { %969 = vset.pattern.permute.xlu0 %v1092_v39  ;;  %vm536_vm13 = vcmask 7168  }
 0x265   : > { %556 = vperm.xlu0 %969, %v534_v38   ;;  %vm553_vm9 = vcmp.eq.s32.totalorder %v552_v40, %v1257_v20  ;;  %v537_v54 = vsel %vm536_vm13, %v535_v53, 0.0 }
 0x2e0   : > { %v557_v41 = vpop.permute.xlu0 %556 }
 0x2e1   : > { %v559_v42 = vsel %vm553_vm9, %v557_v41, 0.0 }
 0x2e2   : > { %v561_v43 = vsel %vm560_vm10, %v559_v42, 0.0 }
 0x2e3   : > { %v562_v44 = vrot.slane %v561_v43, 4 }
 0x2e5   : > { %v563_v45 = vadd.f32 %v562_v44, %v561_v43 }
 0x2e7   : > { %v564_v46 = vrot.slane %v563_v45, 2 }
 0x2e9   : > { %v565_v47 = vadd.f32 %v564_v46, %v563_v45 }
 0x2eb   : > { %v566_v48 = vrot.slane %v565_v47, 1 }
 0x2ed   : > { %v567_v49 = vadd.f32 %v566_v48, %v565_v47 }
 0x2ef   : > { %vm574_vm11 = vcmp.le.f32.partialorder %v567_v49, %v557_v41  ;;  %vm568_vm12 = vcmp.lt.f32.partialorder %v567_v49, %v557_v41 }
 0x2f0   : > { %v798_v51 = vsel %vm574_vm11, 1.0, %v1093_v50  ;;  %v797_v52 = vsel %vm568_vm12, 1.0, %v1093_v50 }
 0x2f1   : > { %v577_v17 = vsel %vm560_vm10, %v798_v51, 0.0  ;;  %v571_v20 = vsel %vm560_vm10, %v797_v52, 0.0 }
 0x2f2   : > { %578 = vadd.xlane.f32.xlu1 %v577_v17  ;;  %572 = vadd.xlane.f32.xlu0 %v571_v20 }
 0x2f6   : > { %538 = vadd.xlane.f32.xlu1 %v537_v54 }
 0x37b   : > { %v579_v55 = vpop.xlane.xlu1 %578  ;;  %v573_v56 = vpop.xlane.xlu0 %572 }
 0x37c   : > { %vm581_vm14 = vcmp.gt.f32.partialorder %v579_v55, 3.0  ;;  %vm580_vm15 = vcmp.le.f32.partialorder %v573_v56, 3.0 }
 0x37d   : > { %vm582_vm2 = vmand %vm580_vm15, %vm581_vm14 }
 0x37e   : > { %v583_v57 = vsel %vm582_vm2, %v534_v38, -inf }
 0x37f   : > { %v584_v58 = vsel %vm536_vm13, %v583_v57, -inf  ;;  %v539_v59 = vpop.xlane.xlu1 %538 }
 0x380   : > { %585 = vmax.xlane.f32.xlu1 %v584_v58  ;;  %v540_v60 = vrot.slane %v539_v59, 4 }
 0x382   : > { %v541_v61 = vadd.f32 %v540_v60, %v539_v59 }
 0x384   : > { %v542_v62 = vrot.slane %v541_v61, 2 }
 0x386   : > { %v543_v63 = vadd.f32 %v542_v62, %v541_v61 }
 0x388   : > { %v544_v0 = vrot.slane %v543_v63, 1 }
 0x38a   : > { %v545_v1 = vadd.f32 %v544_v0, %v543_v63 }
 0x38c   : > { %860 = vpush %v545_v1 }
 0x3bd   : > { %s861_s15 = spop %860 }
 0x3be   : > { %s549_s16 = smul.f32 0.125, %s861_s15 }
 0x3c0   : > { %s550_s7 = smax.f32 %s1094_s8, %s549_s16 }
 0x3c1   : > { %v596_v2 = vstv %s550_s7 }
 0x3c2   : > { %970 = vlog2.f32 %v596_v2 }
 0x3cf   : > { %v971_v7 = vpop.eup %970 }
 0x3d0   : > { %v598_v10 = vmul.f32 0.6931472, %v971_v7 }
 0x409   : > { %v586_v3 = vpop.xlane.xlu1 %585 }
 0x40a   : > { %v587_v4 = vrot.slane %v586_v3, 4 }
 0x40c   : > { %v588_v5 = vmax.f32 %v586_v3, %v587_v4 }
 0x40e   : > { %v589_v6 = vrot.slane %v588_v5, 2 }
 0x410   : > { %v590_v8 = vmax.f32 %v588_v5, %v589_v6 }
 0x412   : > { %v591_v9 = vrot.slane %v590_v8, 1 }
 0x414   : > { %v592_v11 = vmax.f32 %v590_v8, %v591_v9 }
 0x416   : > { %862 = vpush %v592_v11 }
 0x417   : > { %864 = vpush %v598_v10 }
 0x447   : > { %s863_s28 = spop %862 }
 0x448   : > { %s595_s30 = smax.f32 %s863_s28, %s594_s17  ;;  %s865_s14 = spop %864 }
 0x449   : > { %s600_s9 = ssub.f32 %s595_s30, %s1251_s6 }
 0x44b   : > { %v601_v12 = vstv %s600_s9 }
 0x44c   : > { %972 = vrcp.f32 %v601_v12 }
 0x459   : > { %v973_v13 = vpop.eup %972 }
 0x45a   : > { %866 = vpush %v973_v13 }
 0x48b   : > { %s867_s18 = spop %866 }
 0x48c   : > { %s604_s12 = smul.f32 %s867_s18, %s865_s14 }
 0x48e   : > { %s605_s11 = smin.f32 %s1095_s10, %s604_s12 }
 0x48f   : > { %607 = sst [smem:[#allocation7]] %s605_s11 }
 0x490 PF: > { %p799_p1 = scmp.ne.s32.totalorder %s1070_s21, 1 }
 0x491   : > { %s611_s13 = sld [smem:[#allocation7]] (!%p799_p1)  ;;  %s800_s15 = sshll.u32 (!%p799_p1), %s1066_s20, 3 }
 0x492   : > { %610 = sbr.rel (%p799_p1) target bundleno = 1607 (0x647), region = 98  ;;  %s613_s16 = scalar_lea.vmem (!%p799_p1), [#allocation2], %s800_s15 }
 0x497   : > { %v617_v14 = vstv %s1251_s6  ;;  %v1096_v15 = vmov 0.0   ;;  %v614_v18 = vld [vmem:[%s613_s16] sm:$0xff]  ;;  %v620_v24 = vstv %s611_s13  ;;  %v1097_v27 = vmov 0   ;;  %v623_v28 = vld [vmem:[#allocation5] sm:$0xff]  ;;  %v630_v36 = vld [vmem:[#allocation6] sm:$0xff] }
 0x498   : > { %v801_v16 = vsel %vm359_vm1, 1.0, %v1096_v15  ;;  %974 = vset.pattern.permute.xlu0 %v1097_v27  ;;  %vm643_vm3 = vcmask 7168  }
 0x499   : > { %v618_v19 = vmul.f32 %v801_v16, %v617_v14 }
 0x49b   : > { %v619_v23 = vadd.f32 %v618_v19, %v614_v18 }
 0x49d   : > { %v621_v25 = vmul.f32 %v620_v24, %v619_v23 }
 0x49f   : > { %v622_v26 = vsel %vm354_vm0, %v621_v25, -inf }
 0x4a0   : > { %624 = vmax.xlane.f32.xlu0 %v622_v26 }
 0x529   : > { %v625_v29 = vpop.xlane.xlu0 %624 }
 0x52a   : > { %v626_v30 = vmax.f32 %v623_v28, %v625_v29 }
 0x52c   : > { %v627_v31 = vsub.f32 %v623_v28, %v626_v30  ;;  %645 = vst.msk [vmem:[#allocation5] sm:$0xff] %vm643_vm3, %v626_v30  ;;  %634 = vperm.xlu0 %974, %v626_v30  }
 0x52e   : > { %v628_v35 = vmul.f32 1.442695, %v627_v31 }
 0x5a7   : > { %v635_v22 = vpop.permute.xlu0 %634 }
 0x5a8   : > { %v637_v32 = vsub.f32 %v622_v26, %v635_v22 }
 0x5aa   : > { %v638_v33 = vmul.f32 1.442695, %v637_v32 }
 0x5ac   : > { %975 = vpow2.f32 %v638_v33 }
 0x5ad   : > { %977 = vpow2.f32 %v628_v35 }
 0x5b9   : > { %v976_v34 = vpop.eup %975 }
 0x5ba   : > { %640 = vadd.xlane.f32.xlu1 %v976_v34  ;;  %v978_v21 = vpop.eup %977 }
 0x5bb   : > { %v631_v37 = vmul.f32 %v978_v21, %v630_v36 }
 0x643   : > { %v641_v38 = vpop.xlane.xlu1 %640 }
 0x644   : > { %v642_v39 = vadd.f32 %v641_v38, %v631_v37 }
 0x646   : > { %644 = vst.msk [vmem:[#allocation6] sm:$0xff] %vm643_vm3, %v642_v39 }
 0x647 PF: > { %p646_p2 = pnand %p529_p13, %p369_p10 }
 0x648   : > { %s650_s8 = sld [smem:[#allocation7]] (!%p646_p2) }
 0x649   : > { %649 = sbr.rel (%p646_p2) target bundleno = 1839 (0x72f), region = 102 }
 0x64e   : > { %v652_v40 = vld [vmem:[#allocation6] sm:$0xff]  ;;  %679 = sst [smem:[#allocation13]] %s650_s8  ;;  %v656_v41 = vld [vmem:[#allocation3] sm:$0xff]  ;;  %v657_v42 = vstv %s1251_s6  ;;  %v659_v44 = vstv %s650_s8  ;;  %v651_v46 = vld [vmem:[#allocation5] sm:$0xff]  ;;  %vm662_vm0 = vcmask 7168  }
 0x64f   : > { %979 = vlog2.f32 %v652_v40  ;;  %v658_v43 = vadd.f32 %v657_v42, %v656_v41 }
 0x651   : > { %v660_v48 = vmul.f32 %v659_v44, %v658_v43 }
 0x65c   : > { %v980_v45 = vpop.eup %979 }
 0x65d   : > { %v654_v47 = vmul.f32 0.6931472, %v980_v45 }
 0x65f   : > { %v655_v49 = vadd.f32 %v654_v47, %v651_v46 }
 0x661   : > { %v661_v50 = vsub.f32 %v655_v49, %v660_v48 }
 0x663   : > { %v663_v51 = vsel %vm662_vm0, %v661_v50, 0.0 }
 0x664   : > { %664 = vadd.xlane.f32.xlu0 %v663_v51 }
 0x6ed   : > { %v665_v52 = vpop.xlane.xlu0 %664 }
 0x6ee   : > { %v666_v53 = vrot.slane %v665_v52, 4 }
 0x6f0   : > { %v667_v17 = vadd.f32 %v666_v53, %v665_v52 }
 0x6f2   : > { %v668_v20 = vrot.slane %v667_v17, 2 }
 0x6f4   : > { %v669_v54 = vadd.f32 %v668_v20, %v667_v17 }
 0x6f6   : > { %v670_v55 = vrot.slane %v669_v54, 1 }
 0x6f8   : > { %v671_v56 = vadd.f32 %v670_v55, %v669_v54 }
 0x6fa   : > { %868 = vpush %v671_v56 }
 0x72b   : > { %s869_s20 = spop %868 }
 0x72c   : > { %s675_s21 = smul.f32 0.125, %s869_s20 }
 0x72e   : > { %677 = sst [smem:[#allocation12]] %s675_s21 }
 0x72f PF: > { %p888_p3 = scmp.eq.s32.totalorder %s781_s25, 5  ;;  %s1098_s6 = smov [#allocation12]  }
 0x730   : > { %s1099_s28 = smov [#allocation13]  }
 0x731   : > { %875 = dma.smem_to_hbm (%p888_p3), %s1098_s6, 16, %s1404_s4, [#allocation9]  }
 0x732   : > { %877 = dma.smem_to_hbm (%p888_p3), %s1099_s28, 16, %s1405_s5, [#allocation14]  }
 0x733   : > { %1049 = dma.done.wait (%p888_p3), [#allocation9], 16  }
 0x734   : > { %1051 = vsyncadd (%p888_p3), [#allocation9], 4294967280 }
 0x735   : > { %1053 = dma.done.wait (%p888_p3), [#allocation14], 16  }
 0x736   : > { %1055 = vsyncadd (%p888_p3), [#allocation14], 4294967280 }
 0x737   : > { %706 = sfence }
 0x738 PF: > { %s19_s24 = sadd.s32 1, %s1082_s24   ;;  %s1410_s18 = smov %s1062_s19 }
 0x739   : > { %p16_p5 = scmp.ge.s32.totalorder %s19_s24, 8   ;;  %s1411_s19 = smov %s1208_s29 }
 0x73a   : > { %s1412_s20 = smov %s1074_s22  ;;  %s1413_s21 = smov %s1078_s23 }
 0x73b   : > { %s1414_s22 = smov %s1417_s26  ;;  %s1415_s23 = smov %s1421_s27 }
 0x73c   :  { %18 = sbr.rel (!%p16_p5) target bundleno = 6 (0x6), region = 148 }
 0x741   :  { %712 = vsyncpa [#allocation9], 1 }
 0x742   :  { %714 = vsyncpa [#allocation9 + $0x1], 1 }
 0x743   :  { %715 = vsyncpa [#allocation14], 1 }
 0x744   :  { %716 = vsyncpa [#allocation10], 1 }
 0x745   :  { %718 = vsyncpa [#allocation10 + $0x1], 1 }

</bundles_post_ra>
